<compile_context>
chip_gen: v7x
topology: tpu7x:2x2x1
jax: 0.10.0
libtpu: 0.0.40
codegen_flags: <defaults>
</compile_context>

<pallas_src>
import jax
import jax.numpy as jnp
from jax import lax
from jax.experimental import pallas as pl
from jax.experimental.pallas import tpu as pltpu


# ------------------------------ Pallas kernel -------------------------------

def _make_downsample_kernel(ow1, n_out):
    """Four K=4C matmuls over contiguous flat taps + bias, one lane-dense store.

    Refs per grid step (batch/tile block dims squeezed away):
      s_ref: (4C, (TR+2)*OW1)  bf16   flattened s2d row-tile incl. halo rows
      w_ref: (4, C, 4C)        bf16   2x2-conv weights, tap-major
      b_ref: (C, 1)            f32    bias column
      o_ref: (C, TR*OW1)       out    flattened output row-tile (junk last col)
    """
    def kernel(s_ref, w_ref, b_ref, o_ref):
        acc = None
        for dy in range(2):
            for dx in range(2):
                off = dy * ow1 + dx                      # static lane offset
                tap = s_ref[:, off:off + n_out]          # (4C, TR*OW1) bf16
                part = jnp.dot(w_ref[2 * dy + dx], tap,
                               preferred_element_type=jnp.float32)
                acc = part if acc is None else acc + part
        o_ref[...] = (acc + b_ref[...]).astype(o_ref.dtype)   # (C,1) bcasts
    return kernel


# -------------------------------- JAX glue ----------------------------------

def _pick_row_tile(oh, c, ow1, budget_bytes):
    """Largest row-tile TR (a divisor of OH) whose per-step VMEM fits budget."""
    def step_bytes(tr):
        s_tile = 4 * c * (tr + 2) * ow1 * 2     # bf16 s2d tile
        o_tile = c * tr * ow1 * 4               # f32 output tile
        return 2 * s_tile + 2 * o_tile          # both double-buffered
    if step_bytes(oh) <= budget_bytes:
        return oh
    for d in range(oh - 1, 0, -1):
        if oh % d == 0 and step_bytes(d) <= budget_bytes:
            return d
    return 1


def downsample_forward(x_nchw, conv_w, conv_b, out_dtype=jnp.float32):
    """Downsample forward.  x: (B,C,H,W) f32, conv_w: (C,C,4,4), conv_b: (C,)."""
    B, C, H, W = x_nchw.shape
    if H % 2 or W % 2:
        # TODO(synk): odd H/W (PyTorch floor semantics) not supported here.
        raise ValueError("Downsample Pallas kernel requires even H and W")
    OH, OW = H // 2, W // 2
    OW1 = OW + 1

    # ---- space-to-depth relayout (bf16, ~= input byte count) ----
    # Rows: 1 top pad + H + 3 bottom pads -> (OH+2) super-rows; the extra
    # bottom super-row is only ever multiplied into discarded junk outputs.
    xp = jnp.pad(x_nchw, ((0, 0), (0, 0), (1, 3), (1, 1)))
    s2d = xp.reshape(B, C, OH + 2, 2, OW1, 2)
    s2d = s2d.transpose(0, 1, 3, 5, 2, 4)                 # (B, C, 2, 2, OH+2, OW1)
    s2d = s2d.reshape(B, 4 * C, OH + 2, OW1).astype(jnp.bfloat16)

    # ---- conv weights as a 2x2 stride-1 conv over the 4C s2d channels ----
    w2 = conv_w.reshape(C, C, 2, 2, 2, 2)                 # (co, ci, dy, py, dx, px)
    w2 = w2.transpose(2, 4, 0, 1, 3, 5)                   # (dy, dx, co, ci, py, px)
    w2 = w2.reshape(4, C, 4 * C).astype(jnp.bfloat16)
    b2 = conv_b.reshape(C, 1).astype(jnp.float32)

    # ---- row tiling from an explicit VMEM budget (safe for v7x 64 MiB/TC) ----
    w_bufs = 1 if C >= 128 else 2
    budget = 20 * 1024 * 1024 - w_bufs * w2.size * 2
    TR = _pick_row_tile(OH, C, OW1, budget)
    NT = OH // TR
    F = (TR + 2) * OW1          # flattened s2d tile length (incl. 2 halo rows)
    N = TR * OW1                # flattened output tile length (incl. junk col)

    if NT == 1:
        s2d_t = s2d.reshape(B, 1, 4 * C, F)
    else:
        # Duplicate the 2 halo rows per tile; overhead ~2/TR of the s2d bytes.
        s2d_t = jnp.stack(
            [s2d[:, :, t * TR:t * TR + TR + 2, :] for t in range(NT)], axis=1)
        s2d_t = s2d_t.reshape(B, NT, 4 * C, F)

    # Constant-index weight/bias blocks: single-buffer them once the second
    # pipeline buffer would actually cost VMEM (no-op at the demo size).
    const_kwargs = (dict(pipeline_mode=pl.Buffered(buffer_count=1))
                    if C >= 128 else {})

    grid = (B, NT)
    flops = 2 * B * NT * C * (4 * C) * N * 4
    bytes_accessed = (s2d_t.size * 2 + w2.size * 2 + b2.size * 4
                      + B * NT * C * N * jnp.dtype(out_dtype).itemsize)

    out_flat = pl.pallas_call(
        _make_downsample_kernel(OW1, N),
        out_shape=jax.ShapeDtypeStruct((B, NT, C, N), out_dtype),
        grid=grid,
        in_specs=[
            pl.BlockSpec((None, None, 4 * C, F), lambda b, t: (b, t, 0, 0)),
            pl.BlockSpec((4, C, 4 * C), lambda b, t: (0, 0, 0), **const_kwargs),
            pl.BlockSpec((C, 1), lambda b, t: (0, 0), **const_kwargs),
        ],
        out_specs=pl.BlockSpec((None, None, C, N), lambda b, t: (b, t, 0, 0)),
        compiler_params=pltpu.CompilerParams(
            dimension_semantics=("parallel", "parallel"),
            vmem_limit_bytes=48 * 1024 * 1024),
        cost_estimate=pl.CostEstimate(
            flops=flops, transcendentals=0, bytes_accessed=bytes_accessed),
    )(s2d_t, w2, b2)

    # (B, NT, C, TR, OW1) -> (B, C, OH, OW); drops the junk halo column.
    out = out_flat.reshape(B, NT, C, TR, OW1).transpose(0, 2, 1, 3, 4)
    out = out.reshape(B, C, OH, OW1)[:, :, :, :OW]
    return out


# --------------------------- pure-JAX reference -----------------------------

def _ref_forward(x_nchw, conv_w, conv_b):
    y = lax.conv_general_dilated(
        x_nchw, conv_w, window_strides=(2, 2), padding=[(1, 1), (1, 1)],
        dimension_numbers=("NCHW", "OIHW", "NCHW"))
    return y + conv_b.reshape(1, -1, 1, 1)


# ---------------------------------- main -------------------------------------

if __name__ == "__main__":
    B, C, H, W = 2, 4, 16, 16

    key = jax.random.PRNGKey(0)
    k_w, k_b, k_x = jax.random.split(key, 3)
    conv_w = 0.1 * jax.random.normal(k_w, (C, C, 4, 4), jnp.float32)
    conv_b = 0.1 * jax.random.normal(k_b, (C,), jnp.float32)
    x = jax.random.normal(k_x, (B, C, H, W), jnp.float32)

    fwd = jax.jit(downsample_forward)
    out = jax.block_until_ready(fwd(x, conv_w, conv_b))

    ref = jax.block_until_ready(_ref_forward(x, conv_w, conv_b))
    assert out.shape == (B, C, H // 2, W // 2), out.shape
    err = jnp.max(jnp.abs(out - ref))
    assert jnp.allclose(out, ref, rtol=2e-2, atol=2e-2), f"max abs err {err}"

    print("KERNEL_OK")
</pallas_src>

<mosaic_0001>
module attributes {stable_mosaic.version = 11 : i64} {
  func.func @kernel(%arg0: i32, %arg1: i32, %arg2: memref<1x1x16x90xbf16, #tpu.memory_space<vmem>>, %arg3: memref<4x4x16xbf16, #tpu.memory_space<vmem>>, %arg4: memref<4x1xf32, #tpu.memory_space<vmem>>, %arg5: memref<1x1x4x72xf32, #tpu.memory_space<vmem>>) attributes {dimension_semantics = [#tpu.dimension_semantics<parallel>, #tpu.dimension_semantics<parallel>], iteration_bounds = array<i64: 2, 1>, scalar_prefetch = 0 : i64, scratch_operands = 0 : i64, tpu.core_type = #tpu.core_type<tc>, window_params = [{transform_indices = @transform_0, window_bounds = array<i64: 1, 1, 16, 90>}, {pipeline_mode = #tpu.pipeline_mode<synchronous>, transform_indices = @transform_1, window_bounds = array<i64: 4, 4, 16>}, {pipeline_mode = #tpu.pipeline_mode<synchronous>, transform_indices = @transform_2, window_bounds = array<i64: 4, 1>}, {transform_indices = @transform_3, window_bounds = array<i64: 1, 1, 4, 72>}]} {
    %c0 = arith.constant 0 : index
    %c0_0 = arith.constant 0 : index
    %c0_1 = arith.constant 0 : index
    %c0_2 = arith.constant 0 : index
    %0 = vector.load %arg2[%c0, %c0_0, %c0_1, %c0_2] : memref<1x1x16x90xbf16, #tpu.memory_space<vmem>>, vector<1x1x16x72xbf16>
    %1 = vector.shape_cast %0 : vector<1x1x16x72xbf16> to vector<16x72xbf16>
    %c0_3 = arith.constant 0 : index
    %c0_4 = arith.constant 0 : index
    %c0_5 = arith.constant 0 : index
    %2 = vector.load %arg3[%c0_3, %c0_4, %c0_5] : memref<4x4x16xbf16, #tpu.memory_space<vmem>>, vector<1x4x16xbf16>
    %3 = vector.shape_cast %2 : vector<1x4x16xbf16> to vector<4x16xbf16>
    %cst = arith.constant dense<0.000000e+00> : vector<4x72xf32>
    %4 = tpu.matmul %3, %1, %cst {dimension_numbers = #tpu.dot_dimension_numbers<[1], [0], [0], [1], [0, 0, 1, 1], [], []>} : vector<4x16xbf16>, vector<16x72xbf16>, vector<4x72xf32> -> vector<4x72xf32>
    %c0_6 = arith.constant 0 : index
    %c0_7 = arith.constant 0 : index
    %c0_8 = arith.constant 0 : index
    %c1 = arith.constant 1 : index
    %5 = vector.load %arg2[%c0_6, %c0_7, %c0_8, %c1] : memref<1x1x16x90xbf16, #tpu.memory_space<vmem>>, vector<1x1x16x72xbf16>
    %6 = vector.shape_cast %5 : vector<1x1x16x72xbf16> to vector<16x72xbf16>
    %c1_9 = arith.constant 1 : index
    %c0_10 = arith.constant 0 : index
    %c0_11 = arith.constant 0 : index
    %7 = vector.load %arg3[%c1_9, %c0_10, %c0_11] : memref<4x4x16xbf16, #tpu.memory_space<vmem>>, vector<1x4x16xbf16>
    %8 = vector.shape_cast %7 : vector<1x4x16xbf16> to vector<4x16xbf16>
    %cst_12 = arith.constant dense<0.000000e+00> : vector<4x72xf32>
    %9 = tpu.matmul %8, %6, %cst_12 {dimension_numbers = #tpu.dot_dimension_numbers<[1], [0], [0], [1], [0, 0, 1, 1], [], []>} : vector<4x16xbf16>, vector<16x72xbf16>, vector<4x72xf32> -> vector<4x72xf32>
    %10 = arith.addf %4, %9 : vector<4x72xf32>
    %c0_13 = arith.constant 0 : index
    %c0_14 = arith.constant 0 : index
    %c0_15 = arith.constant 0 : index
    %c9 = arith.constant 9 : index
    %11 = vector.load %arg2[%c0_13, %c0_14, %c0_15, %c9] : memref<1x1x16x90xbf16, #tpu.memory_space<vmem>>, vector<1x1x16x72xbf16>
    %12 = vector.shape_cast %11 : vector<1x1x16x72xbf16> to vector<16x72xbf16>
    %c2 = arith.constant 2 : index
    %c0_16 = arith.constant 0 : index
    %c0_17 = arith.constant 0 : index
    %13 = vector.load %arg3[%c2, %c0_16, %c0_17] : memref<4x4x16xbf16, #tpu.memory_space<vmem>>, vector<1x4x16xbf16>
    %14 = vector.shape_cast %13 : vector<1x4x16xbf16> to vector<4x16xbf16>
    %cst_18 = arith.constant dense<0.000000e+00> : vector<4x72xf32>
    %15 = tpu.matmul %14, %12, %cst_18 {dimension_numbers = #tpu.dot_dimension_numbers<[1], [0], [0], [1], [0, 0, 1, 1], [], []>} : vector<4x16xbf16>, vector<16x72xbf16>, vector<4x72xf32> -> vector<4x72xf32>
    %16 = arith.addf %10, %15 : vector<4x72xf32>
    %c0_19 = arith.constant 0 : index
    %c0_20 = arith.constant 0 : index
    %c0_21 = arith.constant 0 : index
    %c10 = arith.constant 10 : index
    %17 = vector.load %arg2[%c0_19, %c0_20, %c0_21, %c10] : memref<1x1x16x90xbf16, #tpu.memory_space<vmem>>, vector<1x1x16x72xbf16>
    %18 = vector.shape_cast %17 : vector<1x1x16x72xbf16> to vector<16x72xbf16>
    %c3 = arith.constant 3 : index
    %c0_22 = arith.constant 0 : index
    %c0_23 = arith.constant 0 : index
    %19 = vector.load %arg3[%c3, %c0_22, %c0_23] : memref<4x4x16xbf16, #tpu.memory_space<vmem>>, vector<1x4x16xbf16>
    %20 = vector.shape_cast %19 : vector<1x4x16xbf16> to vector<4x16xbf16>
    %cst_24 = arith.constant dense<0.000000e+00> : vector<4x72xf32>
    %21 = tpu.matmul %20, %18, %cst_24 {dimension_numbers = #tpu.dot_dimension_numbers<[1], [0], [0], [1], [0, 0, 1, 1], [], []>} : vector<4x16xbf16>, vector<16x72xbf16>, vector<4x72xf32> -> vector<4x72xf32>
    %22 = arith.addf %16, %21 : vector<4x72xf32>
    %c0_25 = arith.constant 0 : index
    %c0_26 = arith.constant 0 : index
    %23 = vector.load %arg4[%c0_25, %c0_26] : memref<4x1xf32, #tpu.memory_space<vmem>>, vector<4x1xf32>
    %24 = vector.broadcast %23 : vector<4x1xf32> to vector<4x72xf32>
    %25 = arith.addf %22, %24 : vector<4x72xf32>
    %c0_27 = arith.constant 0 : index
    %c0_28 = arith.constant 0 : index
    %c0_29 = arith.constant 0 : index
    %c0_30 = arith.constant 0 : index
    %26 = vector.load %arg5[%c0_27, %c0_28, %c0_29, %c0_30] : memref<1x1x4x72xf32, #tpu.memory_space<vmem>>, vector<1x1x4x72xf32>
    %27 = vector.shape_cast %26 : vector<1x1x4x72xf32> to vector<4x72xf32>
    %28 = vector.shape_cast %25 : vector<4x72xf32> to vector<1x1x4x72xf32>
    tpu.vector_store %arg5[%c0_27, %c0_28, %c0_29, %c0_30], %28 {strides = array<i32>} : memref<1x1x4x72xf32, #tpu.memory_space<vmem>>, vector<1x1x4x72xf32>,
    return
  }
  func.func @transform_0(%arg0: i32, %arg1: i32) -> (i32, i32, i32, i32) {
    %c0_i32 = arith.constant 0 : i32
    %c0_i32_0 = arith.constant 0 : i32
    %c0_i32_1 = arith.constant 0 : i32
    return %arg0, %arg1, %c0_i32, %c0_i32_0 : i32, i32, i32, i32
  }
  func.func @transform_1(%arg0: i32, %arg1: i32) -> (i32, i32, i32) {
    %c0_i32 = arith.constant 0 : i32
    %c0_i32_0 = arith.constant 0 : i32
    %c0_i32_1 = arith.constant 0 : i32
    %c0_i32_2 = arith.constant 0 : i32
    return %c0_i32, %c0_i32_0, %c0_i32_1 : i32, i32, i32
  }
  func.func @transform_2(%arg0: i32, %arg1: i32) -> (i32, i32) {
    %c0_i32 = arith.constant 0 : i32
    %c0_i32_0 = arith.constant 0 : i32
    %c0_i32_1 = arith.constant 0 : i32
    return %c0_i32, %c0_i32_0 : i32, i32
  }
  func.func @transform_3(%arg0: i32, %arg1: i32) -> (i32, i32, i32, i32) {
    %c0_i32 = arith.constant 0 : i32
    %c0_i32_0 = arith.constant 0 : i32
    %c0_i32_1 = arith.constant 0 : i32
    return %arg0, %arg1, %c0_i32, %c0_i32_0 : i32, i32, i32, i32
  }
}

</mosaic_0001>

<bundles_post_ra>
// kernel: downsample_forward.1
= control target key start
LH: loop header
LB: loop body
LE: loop exit
PB: predicated region body
PF: predicated region fallthrough
CT: control target
= control target key end

     0   :  { %s626_s12 = smov 0   ;;  %s628_s13 = smov 0   ;;  %s686_s0 = inlined_call_operand.vmem [shape: bf16[2,1,16,90], index: 0, kind: input, shape index: {}]   ;;  %s687_s1 = inlined_call_operand.vmem [shape: bf16[4,4,16], index: 1, kind: input, shape index: {}]   ;;  %s688_s2 = inlined_call_operand.vmem [shape: f32[4,1], index: 2, kind: input, shape index: {}]   ;;  %s689_s3 = inlined_call_operand.vmem [shape: f32[2,1,4,72], index: 3, kind: output, shape index: {}]  }
   0x1   :  { %s630_s14 = smov 0  }
   0x2 LB: > { %s25_s15 = sadd.s32 1, %s594_s13  ;;  %p496_p0 = scmp.ge.s32.totalorder %s598_s14, 1  ;;  %s598_s14 = sphi %s630_s14, %s13_s14   ;;  %s594_s13 = sphi %s628_s13, %s691_s13   ;;  %s590_s12 = sphi %s626_s12, %s690_s12  }
   0x3   : > { %p27_p1 = scmp.ge.s32.totalorder %s25_s15, 2  ;;  %p157_p2 = scmp.lt.s32.totalorder %s598_s14, 3 }
   0x5   : > { %s693_s15 = smov (%p27_p1, %s25_s15), 0  ;;  %p158_p3 = pnand %p496_p0, %p157_p2 }
   0x6   : > { %p187_p4 = scmp.lt.s32.totalorder (!%p158_p3), %s590_s12, 1  ;;  %v600_v0 = vmov (!%p158_p3), 0.0   ;;  %vm601_vm0 = vmmov (!%p158_p3), 0   ;;  %v602_v2 = vmov (!%p158_p3), 0   ;;  %s603_s20 = smov (!%p158_p3), 127   ;;  %vm217_vm1 = vcmask (!%p158_p3), 130048  }
   0x7   : > { %161 = sbr.rel (%p158_p3) target bundleno = 363 (0x16b), region = 32  ;;  %519 = vmatprep.subr.bf16.mxu0 (!%p158_p3), %v600_v0  ;;  %525 = vmatprep.subr.bf16.mxu1 (!%p158_p3), %v600_v0  ;;  %s604_s21 = smov (!%p158_p3), 118   ;;  %v206_v3 = vld [vmem:[%s687_s1] sm:$0x3] (!%p158_p3)  ;;  %v500_v7 = vld [vmem:[%s687_s1 + $0x2] sm:$0x3] (!%p158_p3) }
   0x8   : > { %521 = vmatprep.mubr.msk.bf16.mxu0 (!%p158_p3), %vm601_vm0, %v600_v0  ;;  %527 = vmatprep.mubr.msk.bf16.mxu1 (!%p158_p3), %vm601_vm0, %v600_v0  ;;  %v403_v4 = vld [vmem:[%s688_s2] sm:$0xf] (!%p158_p3)  ;;  %s605_s26 = smov (!%p158_p3), 119   ;;  %v506_v8 = vld [vmem:[%s687_s1 + $0x6] sm:$0x3] (!%p158_p3)  ;;  %vm410_vm2 = vcmask (!%p158_p3), 584704  }
   0x9   : > { %573 = vset.pattern.permute.xlu1 (!%p158_p3), %v602_v2  ;;  %574 = vset.pattern.permute.xlu0 (!%p158_p3), %v602_v2  ;;  %v504_v10 = vld [vmem:[%s687_s1 + $0x4] sm:$0x3] (!%p158_p3) }
   0xe   : > { %s695_s12 = smov (!%p187_p4, %s590_s12), 1 }
   0xf   : > { %s510_s16 = sshll.u32 %s695_s12, 3  ;;  %s499_s6 = sshll.u32 %s695_s12, 2 }
  0x10   : > { %s195_s19 = scalar_lea.vmem %s686_s0, %s510_s16  ;;  %s202_s9 = scalar_lea.vmem %s689_s3, %s499_s6 }
  0x11   : > { %v575_v1 = vld [vmem:[%s195_s19] sm:$0xff]  }
  0x12   : > { %214 = vrot.lane.b32.xlu0 %v575_v1, %s603_s20  ;;  %356 = vrot.lane.b32.xlu1 %v575_v1, %s604_s21 }
  0x13   : > { %526 = vmatpush3.bf16.msra.mxu1 %v575_v1 }
  0x14   : > { %537 = vmatprep.subr.bf16.mxu1 %v600_v0 }
  0x16   : > { %307 = vrot.lane.b32.xlu0 %v575_v1, %s605_s26  ;;  %528 = vmatmul.mubr.msk.bf16.vlgmr.msra.gmra.mrb[0].mxu1 %vm217_vm1, %v206_v3 }
  0x17   : > { %539 = vmatprep.mubr.msk.bf16.mxu1 %vm601_vm0, %v600_v0  ;;  %406 = vperm.xlu1 %573, %v403_v4  }
  0x84   : > { %v215_v5 = vpop.permute.xlu0 %214  ;;  %v357_v6 = vpop.permute.xlu1 %356 }
  0x85   : > { %520 = vmatpush3.bf16.msra.mxu0 %v215_v5  ;;  %538 = vmatpush3.bf16.msra.mxu1 %v357_v6 }
  0x86   : > { %531 = vmatprep.subr.bf16.mxu0 %v600_v0 }
  0x88   : > { %522 = vmatmul.mubr.msk.bf16.vlgmr.msra.gmra.mrb[0].mxu0 %vm217_vm1, %v500_v7  ;;  %v308_v9 = vpop.permute.xlu0 %307  ;;  %540 = vmatmul.mubr.msk.bf16.vlgmr.msra.gmra.mrb[4].mxu1 %vm217_vm1, %v506_v8 }
  0x89   : > { %532 = vmatpush3.bf16.msra.mxu0 %v308_v9  ;;  %533 = vmatprep.mubr.msk.bf16.mxu0 %vm601_vm0, %v600_v0 }
  0x90   : > { %534 = vmatmul.mubr.msk.bf16.vlgmr.msra.gmra.mrb[4].mxu0 %vm217_vm1, %v504_v10 }
  0x96   : > { %v407_v28 = vpop.permute.xlu1 %406 }
  0xe9   : > { %v299_v11 = vpop.f32.mrb[0].mxu1 }
  0xea   : > { %v529_v12 = vpop.f32.mrb[1].mxu1 }
  0xeb   : > { %v302_v13 = vpop.f32.mrb[2].mxu1 }
  0xec   : > { %v530_v14 = vpop.f32.mrb[3].mxu1 }
 0x15b   : > { %v255_v15 = vpop.f32.mrb[0].mxu0  ;;  %v396_v16 = vpop.f32.mrb[4].mxu1 }
 0x15c   : > { %v300_v17 = vadd.f32 %v299_v11, %v255_v15  ;;  %v523_v18 = vpop.f32.mrb[1].mxu0  ;;  %v541_v19 = vpop.f32.mrb[5].mxu1 }
 0x15d   : > { %v258_v20 = vpop.f32.mrb[2].mxu0  ;;  %v399_v21 = vpop.f32.mrb[6].mxu1 }
 0x15e   : > { %v524_v22 = vpop.f32.mrb[3].mxu0  ;;  %v542_v23 = vpop.f32.mrb[7].mxu1 }
 0x163   : > { %v347_v24 = vpop.f32.mrb[4].mxu0 }
 0x164   : > { %v353_v25 = vadd.f32 %v347_v24, %v300_v17  ;;  %v535_v26 = vpop.f32.mrb[5].mxu0 }
 0x165   : > { %v350_v27 = vpop.f32.mrb[6].mxu0 }
 0x166   : > { %v402_v29 = vadd.f32 %v396_v16, %v353_v25  ;;  %v536_v30 = vpop.f32.mrb[7].mxu0 }
 0x168   : > { %v409_v31 = vadd.f32 %v407_v28, %v402_v29 }
 0x16a   : > { %411 = vst.msk [vmem:[%s202_s9] sm:$0xf] %vm410_vm2, %v409_v31 }
 0x16b PF: > { %s13_s14 = sadd.s32 1, %s598_s14   ;;  %s690_s12 = smov %s594_s13 }
 0x16c   : > { %p10_p5 = scmp.ge.s32.totalorder %s13_s14, 4   ;;  %s691_s13 = smov %s693_s15 }
 0x16e   :  { %12 = sbr.rel (!%p10_p5) target bundleno = 2 (0x2), region = 65 }

</bundles_post_ra>
